<compile_context>
chip_gen: v6e
topology: v6e:2x2x1
jax: 0.10.0
libtpu: 0.0.40
codegen_flags: <defaults>
</compile_context>

<pallas_src>
import functools

import numpy as np
import jax
import jax.numpy as jnp
from jax.experimental import pallas as pl
from jax.experimental.pallas import tpu as pltpu


def edge_attention_kernel(f_all_ref, f_col_ref, w_ref, m_ref, o_ref,
                          *, matmul_dtype=None):
    f_all = f_all_ref[...]          # (Bt, N, D)   all src rows of this batch group
    f_col = f_col_ref[...]          # (Bt, Tc, D)  dst rows of this column tile
    w = w_ref[...]                  # (D, D)       nn.Linear weight (out, in)

    bt, tc, d = f_col.shape

    # Linear: t = f_col @ W^T, done as one packed (Bt*Tc, D) matmul,
    # contracting on the last dims (no transpose materialized).
    lhs = f_col.reshape(bt * tc, d)
    w_mm = w
    if matmul_dtype is not None:
        lhs = lhs.astype(matmul_dtype)
        w_mm = w_mm.astype(matmul_dtype)
    t = jax.lax.dot_general(
        lhs, w_mm,
        dimension_numbers=(((1,), (1,)), ((), ())),
        preferred_element_type=jnp.float32,
    ).reshape(bt, tc, d)

    # Scores: s[b, i, j] = sum_d f_all[b, i, d] * t[b, j, d]   -> (Bt, N, Tc)
    q = f_all
    if matmul_dtype is not None:
        q = q.astype(matmul_dtype)
        t = t.astype(matmul_dtype)
    s = jax.lax.dot_general(
        q, t,
        dimension_numbers=(((2,), (2,)), ((0,), (0,))),
        preferred_element_type=jnp.float32,
    )

    # Softmax over dim=1 (the src/row axis), with the edge mask applied
    # multiplicatively after exp (== masked_fill(-inf) + softmax).
    mask = m_ref[...].astype(jnp.float32)                 # (Bt, N, Tc) from int8
    mx = jnp.max(s, axis=1, keepdims=True)                # raw max bounds masked max
    e = jnp.exp(s - mx) * mask
    denom = jnp.sum(e, axis=1, keepdims=True)
    o_ref[...] = (e * pl.reciprocal(denom, approx=True)).astype(o_ref.dtype)


def edge_attention(features, weight, mask, *, batch_tile=None, col_tile=None,
                   matmul_dtype=None, out_dtype=None):
    """features: (B, N, D) f32, weight: (D, D) f32 (out, in), mask: (B, N, N) int8."""
    B, N, D = features.shape
    assert weight.shape == (D, D)
    assert mask.shape == (B, N, N)
    out_dtype = out_dtype or features.dtype

    # Pack enough batch elements per grid step to fill the MXU rows.
    if batch_tile is None:
        cap = max(1, 256 // max(N, 1))
        batch_tile = 1
        for cand in range(1, min(B, cap) + 1):
            if B % cand == 0:
                batch_tile = cand
    assert B % batch_tile == 0, "batch_tile must divide B"

    # Column tile over the dst-node axis (softmax per column is independent).
    if col_tile is None:
        col_tile = 512 if (N > 512 and N % 512 == 0) else N
    assert N % col_tile == 0, "col_tile must divide N"

    grid = (B // batch_tile, N // col_tile)

    kernel = functools.partial(edge_attention_kernel, matmul_dtype=matmul_dtype)

    return pl.pallas_call(
        kernel,
        out_shape=jax.ShapeDtypeStruct((B, N, N), out_dtype),
        grid_spec=pltpu.PrefetchScalarGridSpec(
            num_scalar_prefetch=0,
            grid=grid,
            in_specs=[
                # all src rows of this batch group (block index constant across
                # the inner column axis -> DMA is skipped on revisits)
                pl.BlockSpec((batch_tile, N, D), lambda bi, ci: (bi, 0, 0)),
                # dst rows belonging to this column tile
                pl.BlockSpec((batch_tile, col_tile, D), lambda bi, ci: (bi, ci, 0)),
                # shared Linear weight
                pl.BlockSpec((D, D), lambda bi, ci: (0, 0)),
                # int8 edge mask tile
                pl.BlockSpec((batch_tile, N, col_tile), lambda bi, ci: (bi, 0, ci)),
            ],
            out_specs=pl.BlockSpec((batch_tile, N, col_tile),
                                   lambda bi, ci: (bi, 0, ci)),
        ),
        compiler_params=pltpu.CompilerParams(
            dimension_semantics=("parallel", "parallel"),
            vmem_limit_bytes=48 * 1024 * 1024,
        ),
    )(features, features, weight, mask)


def build_mask(graph_edge, B, N):
    # Glue: equivalent of `mask[graph_edge_] = 1` in the PyTorch module.
    # TODO(synk): the per-batch edge-list scatter is data-dependent host-side
    # work; the dense int8 mask is what the kernel consumes.
    mask = np.zeros((B, N, N), dtype=np.int8)
    for i, edges in enumerate(graph_edge):
        if len(edges) == 0:
            continue
        e = np.asarray(edges, dtype=np.int64)
        mask[i, e[:, 0], e[:, 1]] = 1
    return jnp.asarray(mask)


if __name__ == "__main__":
    key = jax.random.PRNGKey(0)
    B, N, D = 2, 16, 32                      # batch, nodes, feature_dim

    kf, kw = jax.random.split(key)
    features = jax.random.normal(kf, (B, N, D), dtype=jnp.float32)
    # Deterministic init of nn.Linear(D, D, bias=False) weight, shape (out, in).
    weight = (jax.random.uniform(kw, (D, D), dtype=jnp.float32) - 0.5) * (
        2.0 / np.sqrt(D))

    # Synthetic graph edges (per-batch list of (src, dst) pairs).  Every column
    # (dst node) gets at least one edge so no column is fully masked (a fully
    # masked column would yield NaN, exactly as torch softmax would).
    graph_edge = []
    for i in range(B):
        edges = [((c + i) % N, c) for c in range(N)]
        edges += [((c + 3 * i + 5) % N, c) for c in range(0, N, 2)]
        graph_edge.append(edges)

    mask = build_mask(graph_edge, B, N)      # int8 (B, N, N)

    out = edge_attention(features, weight, mask)
    out = jax.block_until_ready(out)

    # Pure-JAX reference with PyTorch semantics (masked_fill(-inf) + softmax dim=1).
    t_ref = jnp.einsum("bnd,kd->bnk", features, weight)           # x @ W^T
    s_ref = jnp.einsum("bnd,bmd->bnm", features, t_ref)
    s_ref = jnp.where(mask == 0, -jnp.inf, s_ref)
    ref = jax.nn.softmax(s_ref, axis=1)
    assert np.allclose(np.asarray(out), np.asarray(ref), atol=2e-3, rtol=2e-2)

    print("KERNEL_OK")
</pallas_src>

<mosaic_0001>
module attributes {stable_mosaic.version = 11 : i64} {
  func.func @edge_attention_kernel(%arg0: i32, %arg1: i32, %arg2: memref<2x16x32xf32, #tpu.memory_space<vmem>>, %arg3: memref<2x16x32xf32, #tpu.memory_space<vmem>>, %arg4: memref<32x32xf32, #tpu.memory_space<vmem>>, %arg5: memref<2x16x16xi8, #tpu.memory_space<vmem>>, %arg6: memref<2x16x16xf32, #tpu.memory_space<vmem>>) attributes {dimension_semantics = [#tpu.dimension_semantics<parallel>, #tpu.dimension_semantics<parallel>], iteration_bounds = array<i64: 1, 1>, scalar_prefetch = 0 : i64, scratch_operands = 0 : i64, tpu.core_type = #tpu.core_type<tc>, window_params = [{transform_indices = @transform_0, window_bounds = array<i64: 2, 16, 32>}, {transform_indices = @transform_1, window_bounds = array<i64: 2, 16, 32>}, {pipeline_mode = #tpu.pipeline_mode<synchronous>, transform_indices = @transform_2, window_bounds = array<i64: 32, 32>}, {transform_indices = @transform_3, window_bounds = array<i64: 2, 16, 16>}, {transform_indices = @transform_4, window_bounds = array<i64: 2, 16, 16>}]} {
    %c0 = arith.constant 0 : index
    %c0_0 = arith.constant 0 : index
    %c0_1 = arith.constant 0 : index
    %0 = vector.load %arg2[%c0, %c0_0, %c0_1] : memref<2x16x32xf32, #tpu.memory_space<vmem>>, vector<2x16x32xf32>
    %c0_2 = arith.constant 0 : index
    %c0_3 = arith.constant 0 : index
    %c0_4 = arith.constant 0 : index
    %1 = vector.load %arg3[%c0_2, %c0_3, %c0_4] : memref<2x16x32xf32, #tpu.memory_space<vmem>>, vector<2x16x32xf32>
    %c0_5 = arith.constant 0 : index
    %c0_6 = arith.constant 0 : index
    %2 = vector.load %arg4[%c0_5, %c0_6] : memref<32x32xf32, #tpu.memory_space<vmem>>, vector<32x32xf32>
    %3 = vector.shape_cast %1 : vector<2x16x32xf32> to vector<32x32xf32>
    %cst = arith.constant dense<0.000000e+00> : vector<32x32xf32>
    %4 = tpu.matmul %3, %2, %cst {dimension_numbers = #tpu.dot_dimension_numbers<[1], [1], [0], [0], [0, 0, 1, 0], [], []>} : vector<32x32xf32>, vector<32x32xf32>, vector<32x32xf32> -> vector<32x32xf32>
    %5 = vector.shape_cast %4 : vector<32x32xf32> to vector<2x16x32xf32>
    %cst_7 = arith.constant dense<0.000000e+00> : vector<2x16x16xf32>
    %6 = tpu.matmul %0, %5, %cst_7 {dimension_numbers = #tpu.dot_dimension_numbers<[2], [2], [1], [1], [0, 0, 0, 1, 1, 1], [0], [0]>} : vector<2x16x32xf32>, vector<2x16x32xf32>, vector<2x16x16xf32> -> vector<2x16x16xf32>
    %c0_8 = arith.constant 0 : index
    %c0_9 = arith.constant 0 : index
    %c0_10 = arith.constant 0 : index
    %7 = vector.load %arg5[%c0_8, %c0_9, %c0_10] : memref<2x16x16xi8, #tpu.memory_space<vmem>>, vector<2x16x16xi8>
    %8 = arith.sitofp %7 : vector<2x16x16xi8> to vector<2x16x16xf32>
    %cst_11 = arith.constant dense<0xFF800000> : vector<2x16xf32>
    %9 = vector.multi_reduction <maximumf>, %6, %cst_11 [1] : vector<2x16x16xf32> to vector<2x16xf32>
    %10 = vector.shape_cast %9 : vector<2x16xf32> to vector<2x1x16xf32>
    %11 = vector.broadcast %10 : vector<2x1x16xf32> to vector<2x16x16xf32>
    %12 = arith.subf %6, %11 : vector<2x16x16xf32>
    %13 = math.exp %12 : vector<2x16x16xf32>
    %14 = arith.mulf %13, %8 : vector<2x16x16xf32>
    %cst_12 = arith.constant dense<0.000000e+00> : vector<2x16xf32>
    %15 = vector.multi_reduction <add>, %14, %cst_12 [1] : vector<2x16x16xf32> to vector<2x16xf32>
    %16 = vector.shape_cast %15 : vector<2x16xf32> to vector<2x1x16xf32>
    %17 = tpu.reciprocal %16 {approx = true} : vector<2x1x16xf32> -> vector<2x1x16xf32>
    %18 = vector.broadcast %17 : vector<2x1x16xf32> to vector<2x16x16xf32>
    %19 = arith.mulf %14, %18 : vector<2x16x16xf32>
    %c0_13 = arith.constant 0 : index
    %c0_14 = arith.constant 0 : index
    %c0_15 = arith.constant 0 : index
    %20 = vector.load %arg6[%c0_13, %c0_14, %c0_15] : memref<2x16x16xf32, #tpu.memory_space<vmem>>, vector<2x16x16xf32>
    tpu.vector_store %arg6[%c0_13, %c0_14, %c0_15], %19 {strides = array<i32>} : memref<2x16x16xf32, #tpu.memory_space<vmem>>, vector<2x16x16xf32>,
    return
  }
  func.func @transform_0(%arg0: i32, %arg1: i32) -> (i32, i32, i32) {
    %c0_i32 = arith.constant 0 : i32
    %c0_i32_0 = arith.constant 0 : i32
    %c0_i32_1 = arith.constant 0 : i32
    return %arg0, %c0_i32, %c0_i32_0 : i32, i32, i32
  }
  func.func @transform_1(%arg0: i32, %arg1: i32) -> (i32, i32, i32) {
    %c0_i32 = arith.constant 0 : i32
    %c0_i32_0 = arith.constant 0 : i32
    return %arg0, %arg1, %c0_i32 : i32, i32, i32
  }
  func.func @transform_2(%arg0: i32, %arg1: i32) -> (i32, i32) {
    %c0_i32 = arith.constant 0 : i32
    %c0_i32_0 = arith.constant 0 : i32
    %c0_i32_1 = arith.constant 0 : i32
    return %c0_i32, %c0_i32_0 : i32, i32
  }
  func.func @transform_3(%arg0: i32, %arg1: i32) -> (i32, i32, i32) {
    %c0_i32 = arith.constant 0 : i32
    %c0_i32_0 = arith.constant 0 : i32
    return %arg0, %c0_i32, %arg1 : i32, i32, i32
  }
  func.func @transform_4(%arg0: i32, %arg1: i32) -> (i32, i32, i32) {
    %c0_i32 = arith.constant 0 : i32
    %c0_i32_0 = arith.constant 0 : i32
    return %arg0, %c0_i32, %arg1 : i32, i32, i32
  }
}

</mosaic_0001>

<bundles_post_ra>
// kernel: tpu_custom_call.1
= control target key start
LH: loop header
LB: loop body
LE: loop exit
PB: predicated region body
PF: predicated region fallthrough
CT: control target
= control target key end

     0   :  { %9 = vsyncpa [#allocation3], 0  ;;  %s758_s0 = inlined_call_operand.hbm [shape: f32[2,16,32], index: 0, kind: input, shape index: {}]   ;;  %s759_s1 = inlined_call_operand.hbm [shape: f32[2,16,32], index: 1, kind: input, shape index: {}]   ;;  %s760_s2 = inlined_call_operand.hbm [shape: f32[32,32], index: 2, kind: input, shape index: {}]   ;;  %s761_s3 = inlined_call_operand.hbm [shape: s8[2,16,16], index: 3, kind: input, shape index: {}]   ;;  %s762_s4 = inlined_call_operand.hbm [shape: f32[2,16,16], index: 4, kind: output, shape index: {}]  }
   0x1   :  { %10 = vsyncpa [#allocation6], 0 }
   0x2   :  { %11 = vsyncpa [#allocation9], 0 }
   0x3   :  { %12 = vsyncpa [#allocation4], 0  ;;  %s661_s15 = smov [#allocation5]   ;;  %s662_s17 = smov [#allocation2]  }
   0x4   :  { %s30_s16 = sshll.u32 %s661_s15, 4  ;;  %s18_s18 = sshll.u32 %s662_s17, 4  ;;  %s31_s16 = int_to_ptr.vmem [resolvable:$true] %s30_s16  ;;  %s19_s18 = int_to_ptr.vmem [resolvable:$true] %s18_s18 }
   0x5   :  { %s561_s19 = scalar_lea.vmem %s31_s16, 512  ;;  %p566_p1 = scmp.lt.s32.totalorder %s31_s16, %s31_s16 }
   0x6   :  { %p562_p0 = scmp.ne.s32.totalorder %s31_s16, %s561_s19  ;;  %p567_p2 = scmp.lt.s32.totalorder %s561_s19, %s561_s19 }
   0x8   :  { %p568_p3 = por %p567_p2, %p566_p1 }
   0xa   :  { %p569_p4 = pnand %p568_p3, %p562_p0 }
   0xc   :  { %572 = shalt.err (!%p569_p4)
}
   0xd   :  { %s663_s20 = smov 128   ;;  %s664_s21 = smov 8  }
   0xe   :  { %36 = dma.hbm_to_vmem [thread:$0]  %s759_s1, 512, %s31_s16, [#allocation6], %s663_s20, %s663_s20, %s664_s21  }
   0xf   :  { %s581_s24 = scalar_lea.vmem %s19_s18, 512  ;;  %p586_p6 = scmp.lt.s32.totalorder %s19_s18, %s19_s18 }
  0x10   :  { %p582_p5 = scmp.ne.s32.totalorder %s19_s18, %s581_s24  ;;  %p587_p7 = scmp.lt.s32.totalorder %s581_s24, %s581_s24 }
  0x12   :  { %p588_p8 = por %p587_p7, %p586_p6 }
  0x14   :  { %p589_p9 = pnand %p588_p8, %p582_p5 }
  0x16   :  { %592 = shalt.err (!%p589_p9)
}
  0x17   :  { %24 = dma.hbm_to_vmem [thread:$0]  %s758_s0, 512, %s19_s18, [#allocation3], %s663_s20, %s663_s20, %s664_s21  }
  0x18   :  { %s665_s27 = smov [#allocation7]   ;;  %s666_s29 = smov [#allocation8]  }
  0x19   :  { %s42_s28 = sshll.u32 %s665_s27, 4  ;;  %s54_s30 = sshll.u32 %s666_s29, 4  ;;  %s43_s28 = int_to_ptr.vmem [resolvable:$true] %s42_s28  ;;  %s55_s30 = int_to_ptr.vmem [resolvable:$true] %s54_s30 }
  0x1a   :  { %s601_s1 = scalar_lea.vmem %s43_s28, 512  ;;  %p606_p11 = scmp.lt.s32.totalorder %s43_s28, %s43_s28 }
  0x1b   :  { %p602_p10 = scmp.ne.s32.totalorder %s43_s28, %s601_s1  ;;  %p607_p12 = scmp.lt.s32.totalorder %s601_s1, %s601_s1 }
  0x1d   :  { %p608_p13 = por %p607_p12, %p606_p11 }
  0x1f   :  { %p609_p0 = pnand %p608_p13, %p602_p10 }
  0x21   :  { %612 = shalt.err (!%p609_p0)
}
  0x22   :  { %48 = dma.hbm_to_vmem [thread:$0]  %s760_s2, 512, %s43_s28, [#allocation6], %s663_s20, %s663_s20, %s664_s21  }
  0x23   :  { %s621_s0 = scalar_lea.vmem %s55_s30, 128  ;;  %p626_p2 = scmp.lt.s32.totalorder %s55_s30, %s55_s30 }
  0x24   :  { %p622_p1 = scmp.ne.s32.totalorder %s55_s30, %s621_s0  ;;  %p627_p3 = scmp.lt.s32.totalorder %s621_s0, %s621_s0 }
  0x26   :  { %p628_p4 = por %p627_p3, %p626_p2 }
  0x28   :  { %p629_p5 = pnand %p628_p4, %p622_p1 }
  0x2a   :  { %632 = shalt.err (!%p629_p5)
}
  0x2b   :  { %s667_s7 = smov 32   ;;  %s668_s8 = smov 2  }
  0x2c   :  { %60 = dma.hbm_to_vmem [thread:$0]  %s761_s3, 128, %s55_s30, [#allocation9], %s667_s7, %s667_s7, %s668_s8  }
  0x2d   :  { %653 = dma.done.wait [#allocation3], 512  }
  0x2e   :  { %654 = vsyncadd [#allocation3], 4294966784 }
  0x2f   :  { %655 = dma.done.wait [#allocation6], 1024  }
  0x30   :  { %656 = vsyncadd [#allocation6], 4294966272 }
  0x31   :  { %657 = dma.done.wait [#allocation9], 128  }
  0x32   :  { %658 = vsyncadd [#allocation9], 4294967168  ;;  %vm85_vm0 = vcmask 261120   ;;  %v84_v0 = vld [vmem:[#allocation7 + $0x18] sm:$0xff]  ;;  %v83_v1 = vld [vmem:[#allocation7 + $0x10] sm:$0xff]  ;;  %vm381_vm1 = vcmask 130048  }
  0x33   :  { %503 = vmatprep.subr.msk.mxu0 %vm85_vm0, %v84_v0  ;;  %v77_v2 = vld [vmem:[#allocation5] sm:$0xff]  ;;  %v82_v3 = vld [vmem:[#allocation7 + $0x8] sm:$0xff]  ;;  %v79_v6 = vld [vmem:[#allocation5 + $0x10] sm:$0xff]  ;;  %s669_s2 = smov [#allocation10]  }
  0x34   :  { %504 = vmatpush3.xpose.msk.msra.mxu0 %vm85_vm0, %v84_v0  ;;  %511 = vmatprep.mubr.msk.f32.mxu0 %vm85_vm0, %v77_v2  ;;  %v81_v4 = vld [vmem:[#allocation7] sm:$0xff]  ;;  %v78_v5 = vld [vmem:[#allocation5 + $0x8] sm:$0xff]  ;;  %v80_v7 = vld [vmem:[#allocation5 + $0x18] sm:$0xff]  ;;  %s449_s3 = sshll.u32 %s669_s2, 4  ;;  %s450_s3 = int_to_ptr.vmem [resolvable:$true] %s449_s3 }
  0x35   :  { %505 = vmatprep.subr.msk.mxu0 %vm85_vm0, %v83_v1  ;;  %v73_v8 = vld [vmem:[#allocation2] sm:$0xff]  ;;  %v74_v12 = vld [vmem:[#allocation2 + $0x8] sm:$0xff]  ;;  %v75_v13 = vld [vmem:[#allocation2 + $0x10] sm:$0xff]  ;;  %s633_s11 = scalar_lea.vmem %s450_s3, 512  ;;  %p638_p7 = scmp.lt.s32.totalorder %s450_s3, %s450_s3 }
  0x36   :  { %521 = vmatprep.mubr.msk.f32.mxu1 %vm85_vm0, %v73_v8  ;;  %v76_v15 = vld [vmem:[#allocation2 + $0x18] sm:$0xff]  ;;  %v480_v42 = vld [vmem:[#allocation8] sm:$0xff]   ;;  %p634_p6 = scmp.ne.s32.totalorder %s450_s3, %s633_s11  ;;  %p639_p8 = scmp.lt.s32.totalorder %s633_s11, %s633_s11 }
  0x37   :  { %v481_v47 = vunpack.c.0.s8 %v480_v42  ;;  %v482_v48 = vunpack.c.1.s8 %v480_v42  ;;  %v485_v53 = vunpack.c.2.s8 %v480_v42  ;;  %v486_v55 = vunpack.c.3.s8 %v480_v42 }
  0x38   :  { %506 = vmatpush3.xpose.msk.msra.mxu0 %vm85_vm0, %v83_v1  ;;  %p640_p9 = por %p639_p8, %p638_p7 }
  0x39   :  { %507 = vmatprep.subr.msk.mxu0 %vm85_vm0, %v82_v3  ;;  %v377_v49 = vcvt.s32.f32 %v481_v47  ;;  %v378_v50 = vcvt.s32.f32 %v482_v48  ;;  %v379_v59 = vcvt.s32.f32 %v485_v53  ;;  %v380_v61 = vcvt.s32.f32 %v486_v55 }
  0x3a   :  { %p641_p10 = pnand %p640_p9, %p634_p6 }
  0x3c   :  { %508 = vmatpush3.xpose.msk.msra.mxu0 %vm85_vm0, %v82_v3 }
  0x3d   :  { %509 = vmatprep.subr.msk.mxu0 %vm85_vm0, %v81_v4 }
  0x40   :  { %510 = vmatpush3.xpose.msk.msra.mxu0 %vm85_vm0, %v81_v4 }
  0x43   :  { %512 = vmatmul.mubr.msk.f32.vlgmr.msra.gmra.mxu0 %vm85_vm0, %v78_v5 }
  0x44   :  { %514 = vmatprep.mubr.msk.f32.mxu0 %vm85_vm0, %v79_v6 }
  0x47   :  { %515 = vmatmul.mubr.msk.f32.gmra.mxu0 %vm85_vm0, %v80_v7 }
 0x103   :  { %v513_v9 = vpop.f32.mrf.mxu0 }
 0x104   :  { %517 = vmatprep.subr.msk.mxu1 %vm85_vm0, %v513_v9 }
 0x105   :  { %v176_v10 = vpop.f32.mrf.mxu0  ;;  %518 = vmatpush3.xpose.msk.msra.mxu1 %vm85_vm0, %v513_v9 }
 0x106   :  { %519 = vmatprep.subr.msk.mxu1 %vm85_vm0, %v176_v10 }
 0x107   :  { %v516_v11 = vpop.f32.mrf.mxu0 }
 0x109   :  { %520 = vmatpush3.xpose.msk.msra.mxu1 %vm85_vm0, %v176_v10  ;;  %v186_v14 = vpop.f32.mrf.mxu0 }
 0x10a   :  { %524 = vmatprep.subr.msk.mxu1 %vm85_vm0, %v516_v11 }
 0x10c   :  { %522 = vmatmul.mubr.msk.f32.vlgmr.msra.gmra.mxu1 %vm85_vm0, %v74_v12 }
 0x10d   :  { %525 = vmatpush3.xpose.msk.msra.mxu1 %vm85_vm0, %v516_v11  ;;  %528 = vmatprep.mubr.msk.f32.mxu1 %vm85_vm0, %v75_v13 }
 0x10e   :  { %526 = vmatprep.subr.msk.mxu1 %vm85_vm0, %v186_v14 }
 0x111   :  { %527 = vmatpush3.xpose.msk.msra.mxu1 %vm85_vm0, %v186_v14 }
 0x114   :  { %529 = vmatmul.mubr.msk.f32.vlgmr.msra.gmra.mxu1 %vm85_vm0, %v76_v15 }
 0x1cc   :  { %v523_v16 = vpop.f32.mrf.mxu1 }
 0x1cd   :  { %v383_v17 = vsel %vm381_vm1, %v523_v16, -inf }
 0x1ce   :  { %v273_v18 = vpop.f32.mrf.mxu1 }
 0x1cf   :  { %v382_v19 = vsel %vm381_vm1, %v273_v18, -inf }
 0x1d0   :  { %v384_v20 = vmax.f32 %v382_v19, %v383_v17 }
 0x1d2   :  { %v385_v21 = vrot.slane %v384_v20, 4 }
 0x1d4   :  { %v386_v22 = vmax.f32 %v384_v20, %v385_v21  ;;  %v530_v23 = vpop.f32.mrf.mxu1 }
 0x1d5   :  { %v392_v26 = vsel %vm381_vm1, %v530_v23, -inf }
 0x1d6   :  { %v387_v24 = vrot.slane %v386_v22, 2  ;;  %v360_v25 = vpop.f32.mrf.mxu1 }
 0x1d7   :  { %v391_v27 = vsel %vm381_vm1, %v360_v25, -inf }
 0x1d8   :  { %v388_v28 = vmax.f32 %v386_v22, %v387_v24  ;;  %v393_v29 = vmax.f32 %v391_v27, %v392_v26 }
 0x1da   :  { %v389_v30 = vrot.slane %v388_v28, 1  ;;  %v394_v31 = vrot.slane %v393_v29, 4 }
 0x1dc   :  { %v390_v32 = vmax.f32 %v388_v28, %v389_v30  ;;  %v395_v33 = vmax.f32 %v393_v29, %v394_v31 }
 0x1de   :  { %v400_v34 = vsub.f32 %v273_v18, %v390_v32  ;;  %v401_v35 = vsub.f32 %v523_v16, %v390_v32  ;;  %v396_v36 = vrot.slane %v395_v33, 2 }
 0x1e0   :  { %v404_v37 = vmul.f32 1.442695, %v400_v34  ;;  %v406_v38 = vmul.f32 1.442695, %v401_v35  ;;  %v397_v39 = vmax.f32 %v395_v33, %v396_v36 }
 0x1e2   :  { %541 = vpow2.f32 %v404_v37  ;;  %v398_v40 = vrot.slane %v397_v39, 1 }
 0x1e3   :  { %543 = vpow2.f32 %v406_v38 }
 0x1e4   :  { %v399_v41 = vmax.f32 %v397_v39, %v398_v40 }
 0x1e6   :  { %v402_v43 = vsub.f32 %v360_v25, %v399_v41  ;;  %v403_v44 = vsub.f32 %v530_v23, %v399_v41 }
 0x1e8   :  { %v408_v45 = vmul.f32 1.442695, %v402_v43  ;;  %v410_v46 = vmul.f32 1.442695, %v403_v44 }
 0x1ea   :  { %545 = vpow2.f32 %v408_v45 }
 0x1eb   :  { %547 = vpow2.f32 %v410_v46 }
 0x1ef   :  { %v542_v51 = vpop.eup %541 }
 0x1f0   :  { %v544_v52 = vpop.eup %543  ;;  %v412_v54 = vmul.f32 %v542_v51, %v377_v49 }
 0x1f1   :  { %v413_v56 = vmul.f32 %v544_v52, %v378_v50 }
 0x1f2   :  { %v416_v57 = vsel %vm381_vm1, %v412_v54, 0.0 }
 0x1f3   :  { %v417_v58 = vsel %vm381_vm1, %v413_v56, 0.0 }
 0x1f4   :  { %v418_v60 = vadd.f32 %v417_v58, %v416_v57 }
 0x1f6   :  { %v419_v62 = vrot.slane %v418_v60, 4 }
 0x1f7   :  { %v546_v63 = vpop.eup %545 }
 0x1f8   :  { %v548_v0 = vpop.eup %547  ;;  %v414_v1 = vmul.f32 %v546_v63, %v379_v59  ;;  %v420_v2 = vadd.f32 %v419_v62, %v418_v60 }
 0x1f9   :  { %v415_v3 = vmul.f32 %v548_v0, %v380_v61 }
 0x1fa   :  { %v421_v4 = vrot.slane %v420_v2, 2  ;;  %v425_v5 = vsel %vm381_vm1, %v414_v1, 0.0 }
 0x1fb   :  { %v426_v6 = vsel %vm381_vm1, %v415_v3, 0.0 }
 0x1fc   :  { %v422_v7 = vadd.f32 %v421_v4, %v420_v2  ;;  %v427_v8 = vadd.f32 %v426_v6, %v425_v5 }
 0x1fe   :  { %v423_v9 = vrot.slane %v422_v7, 1  ;;  %v428_v10 = vrot.slane %v427_v8, 4 }
 0x200   :  { %v424_v11 = vadd.f32 %v423_v9, %v422_v7  ;;  %v429_v12 = vadd.f32 %v428_v10, %v427_v8 }
 0x202   :  { %v430_v13 = vrot.slane %v429_v12, 2  ;;  %549 = vrcp.f32 %v424_v11 }
 0x204   :  { %v431_v14 = vadd.f32 %v430_v13, %v429_v12 }
 0x206   :  { %v432_v15 = vrot.slane %v431_v14, 1 }
 0x208   :  { %v433_v16 = vadd.f32 %v432_v15, %v431_v14 }
 0x20a   :  { %551 = vrcp.f32 %v433_v16 }
 0x20f   :  { %v550_v17 = vpop.eup %549 }
 0x210   :  { %v436_v18 = vmul.f32 %v550_v17, %v412_v54  ;;  %v437_v19 = vmul.f32 %v550_v17, %v413_v56 }
 0x212   :  { %440 = vst.msk [vmem:[#allocation10] sm:$0xff] %vm381_vm1, %v436_v18  ;;  %441 = vst.msk [vmem:[#allocation10 + $0x8] sm:$0xff] %vm381_vm1, %v437_v19 }
 0x217   :  { %v552_v20 = vpop.eup %551 }
 0x218   :  { %v438_v21 = vmul.f32 %v552_v20, %v414_v1  ;;  %v439_v22 = vmul.f32 %v552_v20, %v415_v3 }
 0x21a   :  { %442 = vst.msk [vmem:[#allocation10 + $0x10] sm:$0xff] %vm381_vm1, %v438_v21  ;;  %443 = vst.msk [vmem:[#allocation10 + $0x18] sm:$0xff] %vm381_vm1, %v439_v22 }
 0x21b   :  { %644 = shalt.err (!%p641_p10)
}
 0x21c   :  { %455 = dma.vmem_to_hbm [thread:$0]  %s450_s3, 512, %s762_s4, [#allocation4], %s663_s20, %s663_s20, %s664_s21  }
 0x21d   :  { %659 = dma.done.wait [#allocation4], 512  }
 0x21e   :  { %660 = vsyncadd [#allocation4], 4294966784 }
 0x21f   :  { %459 = vsyncpa [#allocation3], 1 }
 0x220   :  { %460 = vsyncpa [#allocation6], 1 }
 0x221   :  { %461 = vsyncpa [#allocation9], 1 }
 0x222   :  { %462 = vsyncpa [#allocation4], 1 }

</bundles_post_ra>
